<compile_context>
chip_gen: v6e
topology: v6e:2x2x1
jax: 0.10.0
libtpu: 0.0.40
codegen_flags: <defaults>
</compile_context>

<pallas_src>
import math

import jax
import jax.numpy as jnp
from jax.experimental import pallas as pl
from jax.experimental.pallas import tpu as pltpu

IN_F = 28 * 28      # 784
H1 = 128
H2 = 64
H2_PAD = 128        # hidden-2 padded to a full 128-lane width for the MXU
OUT_F = 10


def _round_up(x, m):
    return (x + m - 1) // m * m


def _mlp_kernel(x_ref, w1_ref, b1_ref, w2_ref, b2_ref, w3_ref, b3_ref, o_ref):
    # One batch tile per grid step; weights/biases have constant index maps so
    # they are DMA'd once and stay VMEM-resident. All math is f32: matmuls
    # accumulate on the MXU, bias adds / ReLU on the VPU.
    x = x_ref[...]                                       # (TB, 784) f32

    h1 = jnp.dot(x, w1_ref[...], preferred_element_type=jnp.float32) + b1_ref[...]
    h1 = jnp.maximum(h1, 0.0)                            # (TB, 128)

    h2 = jnp.dot(h1, w2_ref[...], preferred_element_type=jnp.float32) + b2_ref[...]
    h2 = jnp.maximum(h2, 0.0)                            # (TB, 128); lanes 64: are 0

    out = jnp.dot(h2, w3_ref[...], preferred_element_type=jnp.float32) + b3_ref[...]
    o_ref[...] = out.astype(o_ref.dtype)                 # (TB, 10)


def fashion_nn_forward(x_nchw, params):
    """x_nchw: (B, 1, 28, 28) float32 -> logits (B, 10) float32."""
    w1, b1, w2, b2, w3, b3 = params                      # (in, out)-layout f32
    B = x_nchw.shape[0]
    x_flat = x_nchw.reshape(B, IN_F)                     # nn.Flatten on NCHW

    # Pad the hidden-2 width 64 -> 128 so the 2nd/3rd matmuls are lane-dense.
    # Padded lanes of h2 are exactly 0 (zero weight cols + zero bias) and the
    # corresponding zero rows of w3p contribute nothing, so logits match.
    w2p = jnp.zeros((H1, H2_PAD), jnp.float32).at[:, :H2].set(w2)
    b2p = jnp.zeros((1, H2_PAD), jnp.float32).at[:, :H2].set(b2)
    w3p = jnp.zeros((H2_PAD, OUT_F), jnp.float32).at[:H2, :].set(w3)

    # Batch tiling: no wrapper-side padding. Tiny batches get a full-extent
    # block; otherwise an 8-row-aligned tile sized for >= 2 grid steps (so the
    # "parallel" axis can span both TensorCores on v7x), capped at 1024 rows.
    if B <= 8:
        TB = B
    else:
        TB = max(8, min(1024, _round_up(pl.cdiv(B, 2), 8)))
    grid = (pl.cdiv(B, TB),)

    const_spec = lambda shape: pl.BlockSpec(shape, lambda i: (0, 0))  # resident

    out = pl.pallas_call(
        _mlp_kernel,
        out_shape=jax.ShapeDtypeStruct((B, OUT_F), jnp.float32),
        grid=grid,
        in_specs=[
            pl.BlockSpec((TB, IN_F), lambda i: (i, 0)),   # x tile (pipelined)
            const_spec((IN_F, H1)),                       # w1
            const_spec((1, H1)),                          # b1
            const_spec((H1, H2_PAD)),                     # w2 (padded cols)
            const_spec((1, H2_PAD)),                      # b2 (padded)
            const_spec((H2_PAD, OUT_F)),                  # w3 (padded rows)
            const_spec((1, OUT_F)),                       # b3
        ],
        out_specs=pl.BlockSpec((TB, OUT_F), lambda i: (i, 0)),
        compiler_params=pltpu.CompilerParams(
            dimension_semantics=("parallel",),            # batch tiles independent
        ),
    )(x_flat, w1, b1, w2p, b2p, w3p, b3)

    return out


def init_params(key):
    """Deterministic init matching nn.Linear's default U(-1/sqrt(fan_in), +)."""
    def linear(key, fan_in, fan_out):
        kw, kb = jax.random.split(key)
        bound = 1.0 / math.sqrt(fan_in)
        w = jax.random.uniform(kw, (fan_in, fan_out), jnp.float32, -bound, bound)
        b = jax.random.uniform(kb, (1, fan_out), jnp.float32, -bound, bound)
        return w, b

    k1, k2, k3 = jax.random.split(key, 3)
    w1, b1 = linear(k1, IN_F, H1)
    w2, b2 = linear(k2, H1, H2)
    w3, b3 = linear(k3, H2, OUT_F)
    return (w1, b1, w2, b2, w3, b3)


def _reference_f32(x_nchw, params):
    w1, b1, w2, b2, w3, b3 = params
    x = x_nchw.reshape(x_nchw.shape[0], -1)
    h1 = jnp.maximum(x @ w1 + b1, 0.0)
    h2 = jnp.maximum(h1 @ w2 + b2, 0.0)
    return h2 @ w3 + b3


if __name__ == "__main__":
    key = jax.random.PRNGKey(0)
    k_params, k_x = jax.random.split(key)

    params = init_params(k_params)
    x = jax.random.normal(k_x, (2, 1, 28, 28), jnp.float32)   # small MNIST-shaped batch

    out = jax.block_until_ready(fashion_nn_forward(x, params))
    ref = jax.block_until_ready(_reference_f32(x, params))

    assert out.shape == (2, 10), out.shape
    assert jnp.allclose(out, ref, atol=1e-2, rtol=1e-2), "mismatch vs reference"
    print("KERNEL_OK")
</pallas_src>

<mosaic_0001>
module attributes {stable_mosaic.version = 11 : i64} {
  func.func @_mlp_kernel(%arg0: i32, %arg1: memref<2x784xf32, #tpu.memory_space<vmem>>, %arg2: memref<784x128xf32, #tpu.memory_space<vmem>>, %arg3: memref<1x128xf32, #tpu.memory_space<vmem>>, %arg4: memref<128x128xf32, #tpu.memory_space<vmem>>, %arg5: memref<1x128xf32, #tpu.memory_space<vmem>>, %arg6: memref<128x10xf32, #tpu.memory_space<vmem>>, %arg7: memref<1x10xf32, #tpu.memory_space<vmem>>, %arg8: memref<2x10xf32, #tpu.memory_space<vmem>>) attributes {dimension_semantics = [#tpu.dimension_semantics<parallel>], iteration_bounds = array<i64: 1>, scalar_prefetch = 0 : i64, scratch_operands = 0 : i64, tpu.core_type = #tpu.core_type<tc>, window_params = [{transform_indices = @transform_0, window_bounds = array<i64: 2, 784>}, {pipeline_mode = #tpu.pipeline_mode<synchronous>, transform_indices = @transform_1, window_bounds = array<i64: 784, 128>}, {pipeline_mode = #tpu.pipeline_mode<synchronous>, transform_indices = @transform_2, window_bounds = array<i64: 1, 128>}, {pipeline_mode = #tpu.pipeline_mode<synchronous>, transform_indices = @transform_3, window_bounds = array<i64: 128, 128>}, {pipeline_mode = #tpu.pipeline_mode<synchronous>, transform_indices = @transform_4, window_bounds = array<i64: 1, 128>}, {pipeline_mode = #tpu.pipeline_mode<synchronous>, transform_indices = @transform_5, window_bounds = array<i64: 128, 10>}, {pipeline_mode = #tpu.pipeline_mode<synchronous>, transform_indices = @transform_6, window_bounds = array<i64: 1, 10>}, {transform_indices = @transform_7, window_bounds = array<i64: 2, 10>}]} {
    %c0 = arith.constant 0 : index
    %c0_0 = arith.constant 0 : index
    %0 = vector.load %arg1[%c0, %c0_0] : memref<2x784xf32, #tpu.memory_space<vmem>>, vector<2x784xf32>
    %c0_1 = arith.constant 0 : index
    %c0_2 = arith.constant 0 : index
    %1 = vector.load %arg2[%c0_1, %c0_2] : memref<784x128xf32, #tpu.memory_space<vmem>>, vector<784x128xf32>
    %cst = arith.constant dense<0.000000e+00> : vector<2x128xf32>
    %2 = tpu.matmul %0, %1, %cst {dimension_numbers = #tpu.dot_dimension_numbers<[1], [0], [0], [1], [0, 0, 1, 1], [], []>} : vector<2x784xf32>, vector<784x128xf32>, vector<2x128xf32> -> vector<2x128xf32>
    %c0_3 = arith.constant 0 : index
    %c0_4 = arith.constant 0 : index
    %3 = vector.load %arg3[%c0_3, %c0_4] : memref<1x128xf32, #tpu.memory_space<vmem>>, vector<1x128xf32>
    %4 = vector.broadcast %3 : vector<1x128xf32> to vector<2x128xf32>
    %5 = arith.addf %2, %4 : vector<2x128xf32>
    %cst_5 = arith.constant 0.000000e+00 : f32
    %6 = vector.broadcast %cst_5 : f32 to vector<2x128xf32>
    %7 = arith.maximumf %5, %6 : vector<2x128xf32>
    %c0_6 = arith.constant 0 : index
    %c0_7 = arith.constant 0 : index
    %8 = vector.load %arg4[%c0_6, %c0_7] : memref<128x128xf32, #tpu.memory_space<vmem>>, vector<128x128xf32>
    %cst_8 = arith.constant dense<0.000000e+00> : vector<2x128xf32>
    %9 = tpu.matmul %7, %8, %cst_8 {dimension_numbers = #tpu.dot_dimension_numbers<[1], [0], [0], [1], [0, 0, 1, 1], [], []>} : vector<2x128xf32>, vector<128x128xf32>, vector<2x128xf32> -> vector<2x128xf32>
    %c0_9 = arith.constant 0 : index
    %c0_10 = arith.constant 0 : index
    %10 = vector.load %arg5[%c0_9, %c0_10] : memref<1x128xf32, #tpu.memory_space<vmem>>, vector<1x128xf32>
    %11 = vector.broadcast %10 : vector<1x128xf32> to vector<2x128xf32>
    %12 = arith.addf %9, %11 : vector<2x128xf32>
    %cst_11 = arith.constant 0.000000e+00 : f32
    %13 = vector.broadcast %cst_11 : f32 to vector<2x128xf32>
    %14 = arith.maximumf %12, %13 : vector<2x128xf32>
    %c0_12 = arith.constant 0 : index
    %c0_13 = arith.constant 0 : index
    %15 = vector.load %arg6[%c0_12, %c0_13] : memref<128x10xf32, #tpu.memory_space<vmem>>, vector<128x10xf32>
    %cst_14 = arith.constant dense<0.000000e+00> : vector<2x10xf32>
    %16 = tpu.matmul %14, %15, %cst_14 {dimension_numbers = #tpu.dot_dimension_numbers<[1], [0], [0], [1], [0, 0, 1, 1], [], []>} : vector<2x128xf32>, vector<128x10xf32>, vector<2x10xf32> -> vector<2x10xf32>
    %c0_15 = arith.constant 0 : index
    %c0_16 = arith.constant 0 : index
    %17 = vector.load %arg7[%c0_15, %c0_16] : memref<1x10xf32, #tpu.memory_space<vmem>>, vector<1x10xf32>
    %18 = vector.broadcast %17 : vector<1x10xf32> to vector<2x10xf32>
    %19 = arith.addf %16, %18 : vector<2x10xf32>
    %c0_17 = arith.constant 0 : index
    %c0_18 = arith.constant 0 : index
    %20 = vector.load %arg8[%c0_17, %c0_18] : memref<2x10xf32, #tpu.memory_space<vmem>>, vector<2x10xf32>
    tpu.vector_store %arg8[%c0_17, %c0_18], %19 {strides = array<i32>} : memref<2x10xf32, #tpu.memory_space<vmem>>, vector<2x10xf32>,
    return
  }
  func.func @transform_0(%arg0: i32) -> (i32, i32) {
    %c0_i32 = arith.constant 0 : i32
    %c0_i32_0 = arith.constant 0 : i32
    return %arg0, %c0_i32 : i32, i32
  }
  func.func @transform_1(%arg0: i32) -> (i32, i32) {
    %c0_i32 = arith.constant 0 : i32
    %c0_i32_0 = arith.constant 0 : i32
    %c0_i32_1 = arith.constant 0 : i32
    return %c0_i32, %c0_i32_0 : i32, i32
  }
  func.func @transform_2(%arg0: i32) -> (i32, i32) {
    %c0_i32 = arith.constant 0 : i32
    %c0_i32_0 = arith.constant 0 : i32
    %c0_i32_1 = arith.constant 0 : i32
    return %c0_i32, %c0_i32_0 : i32, i32
  }
  func.func @transform_3(%arg0: i32) -> (i32, i32) {
    %c0_i32 = arith.constant 0 : i32
    %c0_i32_0 = arith.constant 0 : i32
    %c0_i32_1 = arith.constant 0 : i32
    return %c0_i32, %c0_i32_0 : i32, i32
  }
  func.func @transform_4(%arg0: i32) -> (i32, i32) {
    %c0_i32 = arith.constant 0 : i32
    %c0_i32_0 = arith.constant 0 : i32
    %c0_i32_1 = arith.constant 0 : i32
    return %c0_i32, %c0_i32_0 : i32, i32
  }
  func.func @transform_5(%arg0: i32) -> (i32, i32) {
    %c0_i32 = arith.constant 0 : i32
    %c0_i32_0 = arith.constant 0 : i32
    %c0_i32_1 = arith.constant 0 : i32
    return %c0_i32, %c0_i32_0 : i32, i32
  }
  func.func @transform_6(%arg0: i32) -> (i32, i32) {
    %c0_i32 = arith.constant 0 : i32
    %c0_i32_0 = arith.constant 0 : i32
    %c0_i32_1 = arith.constant 0 : i32
    return %c0_i32, %c0_i32_0 : i32, i32
  }
  func.func @transform_7(%arg0: i32) -> (i32, i32) {
    %c0_i32 = arith.constant 0 : i32
    %c0_i32_0 = arith.constant 0 : i32
    return %arg0, %c0_i32 : i32, i32
  }
}

</mosaic_0001>

<bundles_post_ra>
// kernel: tpu_custom_call.1
= control target key start
LH: loop header
LB: loop body
LE: loop exit
PB: predicated region body
PF: predicated region fallthrough
CT: control target
= control target key end

     0   :  { %12 = vsyncpa [#allocation3], 0  ;;  %s1168_s0 = inlined_call_operand.vmem [shape: f32[2,784], index: 0, kind: input, shape index: {}]   ;;  %s1169_s1 = inlined_call_operand.hbm [shape: f32[784,128], index: 1, kind: input, shape index: {}]   ;;  %s1170_s2 = inlined_call_operand.vmem [shape: f32[1,128], index: 2, kind: input, shape index: {}]   ;;  %s1171_s3 = inlined_call_operand.vmem [shape: f32[128,128], index: 3, kind: input, shape index: {}]   ;;  %s1172_s4 = inlined_call_operand.vmem [shape: f32[1,128], index: 4, kind: input, shape index: {}]   ;;  %s1173_s5 = inlined_call_operand.vmem [shape: f32[128,10], index: 5, kind: input, shape index: {}]   ;;  %s1174_s6 = inlined_call_operand.vmem [shape: f32[1,10], index: 6, kind: input, shape index: {}]   ;;  %s1175_s7 = inlined_call_operand.hbm [shape: f32[2,10], index: 7, kind: output, shape index: {}]  }
   0x1   :  { %13 = vsyncpa [#allocation4], 0  ;;  %s953_s24 = smov [#allocation2]  }
   0x2   :  { %s21_s25 = sshll.u32 %s953_s24, 4  ;;  %s22_s25 = int_to_ptr.vmem [resolvable:$true] %s21_s25 }
   0x3   :  { %s917_s26 = scalar_lea.vmem %s22_s25, 12544  ;;  %p922_p1 = scmp.lt.s32.totalorder %s22_s25, %s22_s25 }
   0x4   :  { %p918_p0 = scmp.ne.s32.totalorder %s22_s25, %s917_s26  ;;  %p923_p2 = scmp.lt.s32.totalorder %s917_s26, %s917_s26 }
   0x6   :  { %p924_p3 = por %p923_p2, %p922_p1 }
   0x8   :  { %p925_p4 = pnand %p924_p3, %p918_p0 }
   0xa   :  { %928 = shalt.err (!%p925_p4)
}
   0xb   :  { %s954_s27 = smov 128   ;;  %s955_s28 = smov 8  }
   0xc   :  { %27 = dma.hbm_to_vmem [thread:$0]  %s1169_s1, 12544, %s22_s25, [#allocation3], %s954_s27, %s954_s27, %s955_s28  }
   0xd   :  { %949 = dma.done.wait [#allocation3], 12544  }
   0xe   :  { %950 = vsyncadd [#allocation3], 4294954752  ;;  %v74_v0 = vld [vmem:[#allocation2 + $0xf8] sm:$0xff]  ;;  %v73_v2 = vld [vmem:[#allocation2 + $0xf0] sm:$0xff]  ;;  %v956_v27 = vmov 1983009808   ;;  %v154_v29 = vlaneseq }
   0xf   :  { %v58_v1 = vld [vmem:[#allocation2 + $0x78] sm:$0xff]  ;;  %681 = vmatprep.subr.mxu0 %v74_v0  ;;  %v57_v4 = vld [vmem:[#allocation2 + $0x70] sm:$0xff]  ;;  %v72_v6 = vld [vmem:[#allocation2 + $0xe8] sm:$0xff]  ;;  %v152_v28 = vunpack.c.l.s4 %v956_v27  ;;  %vm189_vm0 = vcmask 130048   ;;  %vm958_vm1 = vmmov 0   ;;  %s959_s27 = smov [#allocation5]  }
  0x10   :  { %v106_v3 = vld [vmem:[#allocation2 + $0x1f8] sm:$0xff]  ;;  %682 = vmatpush3.msra.mxu0 %v58_v1  ;;  %v105_v7 = vld [vmem:[#allocation2 + $0x1f0] sm:$0xff]  ;;  %v56_v8 = vld [vmem:[#allocation2 + $0x68] sm:$0xff]  ;;  %v155_v39 = vshrl.u32 %v154_v29, 7  ;;  %s668_s28 = sshll.u32 %s959_s27, 4  ;;  %vm660_vm2 = vcmask 74752   ;;  %s669_s28 = int_to_ptr.vmem [resolvable:$true] %s668_s28 }
  0x11   :  { %v90_v5 = vld [vmem:[#allocation2 + $0x178] sm:$0xff]  ;;  %716 = vmatprep.subr.mxu1 %v106_v3  ;;  %683 = vmatprep.subr.mxu0 %v73_v2  ;;  %v89_v9 = vld [vmem:[#allocation2 + $0x170] sm:$0xff]  ;;  %v104_v10 = vld [vmem:[#allocation2 + $0x1e8] sm:$0xff]  ;;  %v153_v38 = vunpack.c.0.s8 %v152_v28  ;;  %p934_p6 = scmp.lt.s32.totalorder %s669_s28, %s669_s28 }
  0x12   :  { %717 = vmatpush3.msra.mxu1 %v90_v5  ;;  %684 = vmatpush3.msra.mxu0 %v57_v4  ;;  %v71_v11 = vld [vmem:[#allocation2 + $0xe0] sm:$0xff]  ;;  %v88_v12 = vld [vmem:[#allocation2 + $0x168] sm:$0xff]  ;;  %v70_v15 = vld [vmem:[#allocation2 + $0xd8] sm:$0xff] }
  0x13   :  { %718 = vmatprep.subr.mxu1 %v105_v7  ;;  %685 = vmatprep.subr.mxu0 %v72_v6  ;;  %v55_v13 = vld [vmem:[#allocation2 + $0x60] sm:$0xff]  ;;  %v54_v17 = vld [vmem:[#allocation2 + $0x58] sm:$0xff]  ;;  %v69_v19 = vld [vmem:[#allocation2 + $0xd0] sm:$0xff]  ;;  %v1003_v48 = vsub.s32 %v153_v38, %v155_v39 }
  0x14   :  { %719 = vmatpush3.msra.mxu1 %v89_v9  ;;  %v103_v14 = vld [vmem:[#allocation2 + $0x1e0] sm:$0xff]  ;;  %686 = vmatpush3.msra.mxu0 %v56_v8  ;;  %v102_v18 = vld [vmem:[#allocation2 + $0x1d8] sm:$0xff]  ;;  %v53_v21 = vld [vmem:[#allocation2 + $0x50] sm:$0xff] }
  0x15   :  { %720 = vmatprep.subr.mxu1 %v104_v10  ;;  %v87_v16 = vld [vmem:[#allocation2 + $0x160] sm:$0xff]  ;;  %687 = vmatprep.subr.mxu0 %v71_v11  ;;  %v86_v20 = vld [vmem:[#allocation2 + $0x158] sm:$0xff]  ;;  %v101_v22 = vld [vmem:[#allocation2 + $0x1d0] sm:$0xff] }
  0x16   :  { %721 = vmatpush3.msra.mxu1 %v88_v12  ;;  %688 = vmatpush3.msra.mxu0 %v55_v13  ;;  %v68_v23 = vld [vmem:[#allocation2 + $0xc8] sm:$0xff]  ;;  %v85_v24 = vld [vmem:[#allocation2 + $0x150] sm:$0xff]  ;;  %v67_v30 = vld [vmem:[#allocation2 + $0xc0] sm:$0xff] }
  0x17   :  { %722 = vmatprep.subr.mxu1 %v103_v14  ;;  %689 = vmatprep.subr.mxu0 %v70_v15  ;;  %v52_v25 = vld [vmem:[#allocation2 + $0x48] sm:$0xff]  ;;  %v51_v32 = vld [vmem:[#allocation2 + $0x40] sm:$0xff]  ;;  %v66_v34 = vld [vmem:[#allocation2 + $0xb8] sm:$0xff] }
  0x18   :  { %723 = vmatpush3.msra.mxu1 %v87_v16  ;;  %690 = vmatpush3.msra.mxu0 %v54_v17  ;;  %v100_v26 = vld [vmem:[#allocation2 + $0x1c8] sm:$0xff]  ;;  %v99_v33 = vld [vmem:[#allocation2 + $0x1c0] sm:$0xff]  ;;  %v50_v36 = vld [vmem:[#allocation2 + $0x38] sm:$0xff] }
  0x19   :  { %724 = vmatprep.subr.mxu1 %v102_v18  ;;  %691 = vmatprep.subr.mxu0 %v69_v19  ;;  %v84_v31 = vld [vmem:[#allocation2 + $0x148] sm:$0xff]  ;;  %v83_v35 = vld [vmem:[#allocation2 + $0x140] sm:$0xff]  ;;  %v98_v37 = vld [vmem:[#allocation2 + $0x1b8] sm:$0xff] }
  0x1a   :  { %725 = vmatpush3.msra.mxu1 %v86_v20  ;;  %692 = vmatpush3.msra.mxu0 %v53_v21  ;;  %v65_v40 = vld [vmem:[#allocation2 + $0xb0] sm:$0xff]  ;;  %v82_v41 = vld [vmem:[#allocation2 + $0x138] sm:$0xff]  ;;  %v64_v44 = vld [vmem:[#allocation2 + $0xa8] sm:$0xff] }
  0x1b   :  { %726 = vmatprep.subr.mxu1 %v101_v22  ;;  %693 = vmatprep.subr.mxu0 %v68_v23  ;;  %v49_v42 = vld [vmem:[#allocation2 + $0x30] sm:$0xff]  ;;  %v48_v46 = vld [vmem:[#allocation2 + $0x28] sm:$0xff]  ;;  %v63_v49 = vld [vmem:[#allocation2 + $0xa0] sm:$0xff] }
  0x1c   :  { %727 = vmatpush3.msra.mxu1 %v85_v24  ;;  %694 = vmatpush3.msra.mxu0 %v52_v25  ;;  %v97_v43 = vld [vmem:[#allocation2 + $0x1b0] sm:$0xff]  ;;  %v96_v47 = vld [vmem:[#allocation2 + $0x1a8] sm:$0xff]  ;;  %v41_v51 = vld [vmem:[%s1168_s0] sm:$0xff]  ;;  %v957_v25 = vmov 0.0  }
  0x1d   :  { %728 = vmatprep.subr.mxu1 %v100_v26  ;;  %695 = vmatprep.subr.mxu0 %v67_v30  ;;  %v81_v45 = vld [vmem:[#allocation2 + $0x130] sm:$0xff]  ;;  %v80_v50 = vld [vmem:[#allocation2 + $0x128] sm:$0xff]  ;;  %v47_v52 = vld [vmem:[#allocation2 + $0x20] sm:$0xff]  ;;  %v157_v58 = vrot.slane %v41_v51, %v1003_v48  ;;  %v150_v59 = vcombine.high %v41_v51, %v41_v51 }
  0x1e   :  { %729 = vmatpush3.msra.mxu1 %v84_v31  ;;  %696 = vmatpush3.msra.mxu0 %v51_v32  ;;  %v95_v53 = vld [vmem:[#allocation2 + $0x1a0] sm:$0xff]  ;;  %v62_v54 = vld [vmem:[#allocation2 + $0x98] sm:$0xff]  ;;  %v61_v60 = vld [vmem:[#allocation2 + $0x90] sm:$0xff] }
  0x1f   :  { %730 = vmatprep.subr.mxu1 %v99_v33  ;;  %697 = vmatprep.subr.mxu0 %v66_v34  ;;  %v79_v55 = vld [vmem:[#allocation2 + $0x120] sm:$0xff]  ;;  %v46_v56 = vld [vmem:[#allocation2 + $0x18] sm:$0xff]  ;;  %v45_v62 = vld [vmem:[#allocation2 + $0x10] sm:$0xff]  ;;  %v165_v4 = vcombine.high %v157_v58, %v157_v58  ;;  %v164_v5 = vrot.slane %v150_v59, %v1003_v48 }
  0x20   :  { %731 = vmatpush3.msra.mxu1 %v83_v35  ;;  %698 = vmatpush3.msra.mxu0 %v50_v36  ;;  %v94_v57 = vld [vmem:[#allocation2 + $0x198] sm:$0xff]  ;;  %v93_v63 = vld [vmem:[#allocation2 + $0x190] sm:$0xff]  ;;  %v60_v0 = vld [vmem:[#allocation2 + $0x88] sm:$0xff] }
  0x21   :  { %732 = vmatprep.subr.mxu1 %v98_v37  ;;  %699 = vmatprep.subr.mxu0 %v65_v40  ;;  %v78_v61 = vld [vmem:[#allocation2 + $0x118] sm:$0xff]  ;;  %v77_v1 = vld [vmem:[#allocation2 + $0x110] sm:$0xff]  ;;  %v44_v2 = vld [vmem:[#allocation2 + $0x8] sm:$0xff]  ;;  %v166_v12 = vcombine.high %v164_v5, %v164_v5 }
  0x22   :  { %733 = vmatpush3.msra.mxu1 %v82_v41  ;;  %700 = vmatpush3.msra.mxu0 %v49_v42  ;;  %v92_v3 = vld [vmem:[#allocation2 + $0x188] sm:$0xff]  ;;  %v59_v6 = vld [vmem:[#allocation2 + $0x80] sm:$0xff]  ;;  %v138_v10 = vld [vmem:[#allocation2 + $0x2f8] sm:$0xff] }
  0x23   :  { %734 = vmatprep.subr.mxu1 %v97_v43  ;;  %701 = vmatprep.subr.mxu0 %v64_v44  ;;  %v43_v7 = vld [vmem:[#allocation2] sm:$0xff]  ;;  %v76_v8 = vld [vmem:[#allocation2 + $0x108] sm:$0xff]  ;;  %v122_v13 = vld [vmem:[#allocation2 + $0x278] sm:$0xff] }
  0x24   :  { %735 = vmatpush3.msra.mxu1 %v81_v45  ;;  %702 = vmatpush3.msra.mxu0 %v48_v46  ;;  %v91_v9 = vld [vmem:[#allocation2 + $0x180] sm:$0xff]  ;;  %v42_v14 = vld [vmem:[%s1168_s0 + $0x8] sm:$0x3f]  ;;  %v137_v15 = vld [vmem:[#allocation2 + $0x2f0] sm:$0xff] }
  0x25   :  { %736 = vmatprep.subr.mxu1 %v96_v47  ;;  %703 = vmatprep.subr.mxu0 %v63_v49  ;;  %v75_v11 = vld [vmem:[#allocation2 + $0x100] sm:$0xff]  ;;  %v1014_v16 = vrot.slane %v42_v14, %v1003_v48  ;;  %v121_v17 = vld [vmem:[#allocation2 + $0x270] sm:$0xff]  ;;  %v136_v18 = vld [vmem:[#allocation2 + $0x2e8] sm:$0xff]  ;;  %v167_v19 = vcombine.high %v42_v14, %v42_v14 }
  0x26   :  { %737 = vmatpush3.msra.mxu1 %v80_v50  ;;  %704 = vmatpush3.msra.mxu0 %v47_v52  ;;  %v120_v21 = vld [vmem:[#allocation2 + $0x268] sm:$0xff]  ;;  %v135_v23 = vld [vmem:[#allocation2 + $0x2e0] sm:$0xff]  ;;  %v134_v27 = vld [vmem:[#allocation2 + $0x2d8] sm:$0xff] }
  0x27   :  { %738 = vmatprep.subr.mxu1 %v95_v53  ;;  %705 = vmatprep.subr.mxu0 %v62_v54  ;;  %v182_v20 = vcombine.high %v1014_v16, %v1014_v16  ;;  %v140_v22 = vld [vmem:[#allocation2 + $0x308] sm:$0xff]  ;;  %v119_v24 = vld [vmem:[#allocation2 + $0x260] sm:$0xff]  ;;  %v181_v28 = vrot.slane %v167_v19, %v1003_v48  ;;  %v118_v29 = vld [vmem:[#allocation2 + $0x258] sm:$0xff] }
  0x28   :  { %739 = vmatpush3.msra.mxu1 %v79_v55  ;;  %706 = vmatpush3.msra.mxu0 %v46_v56  ;;  %v139_v26 = vld [vmem:[#allocation2 + $0x300] sm:$0xff]  ;;  %v133_v30 = vld [vmem:[#allocation2 + $0x2d0] sm:$0xff]  ;;  %v132_v32 = vld [vmem:[#allocation2 + $0x2c8] sm:$0xff] }
  0x29   :  { %740 = vmatprep.subr.mxu1 %v94_v57  ;;  %707 = vmatprep.subr.mxu0 %v61_v60  ;;  %v117_v31 = vld [vmem:[#allocation2 + $0x250] sm:$0xff]  ;;  %v116_v33 = vld [vmem:[#allocation2 + $0x248] sm:$0xff]  ;;  %v131_v34 = vld [vmem:[#allocation2 + $0x2c0] sm:$0xff] }
  0x2a   :  { %741 = vmatpush3.msra.mxu1 %v78_v61  ;;  %708 = vmatpush3.msra.mxu0 %v45_v62  ;;  %v115_v35 = vld [vmem:[#allocation2 + $0x240] sm:$0xff]  ;;  %v130_v36 = vld [vmem:[#allocation2 + $0x2b8] sm:$0xff]  ;;  %v129_v38 = vld [vmem:[#allocation2 + $0x2b0] sm:$0xff] }
  0x2b   :  { %742 = vmatprep.subr.mxu1 %v93_v63  ;;  %709 = vmatprep.subr.mxu0 %v60_v0  ;;  %v114_v37 = vld [vmem:[#allocation2 + $0x238] sm:$0xff]  ;;  %v113_v39 = vld [vmem:[#allocation2 + $0x230] sm:$0xff]  ;;  %v128_v40 = vld [vmem:[#allocation2 + $0x2a8] sm:$0xff] }
  0x2c   :  { %743 = vmatpush3.msra.mxu1 %v77_v1  ;;  %710 = vmatpush3.msra.mxu0 %v44_v2  ;;  %v112_v41 = vld [vmem:[#allocation2 + $0x228] sm:$0xff]  ;;  %v127_v42 = vld [vmem:[#allocation2 + $0x2a0] sm:$0xff]  ;;  %v126_v44 = vld [vmem:[#allocation2 + $0x298] sm:$0xff] }
  0x2d   :  { %744 = vmatprep.subr.mxu1 %v92_v3  ;;  %711 = vmatprep.subr.mxu0 %v59_v6  ;;  %v111_v43 = vld [vmem:[#allocation2 + $0x220] sm:$0xff]  ;;  %v110_v45 = vld [vmem:[#allocation2 + $0x218] sm:$0xff]  ;;  %v125_v46 = vld [vmem:[#allocation2 + $0x290] sm:$0xff] }
  0x2e   :  { %256 = vmatprep.mubr.f32.mxu0 %v165_v4  ;;  %712 = vmatpush3.msra.mxu0 %v43_v7  ;;  %v109_v47 = vld [vmem:[#allocation2 + $0x210] sm:$0xff]  ;;  %v124_v48 = vld [vmem:[#allocation2 + $0x288] sm:$0xff]  ;;  %v123_v50 = vld [vmem:[#allocation2 + $0x280] sm:$0xff] }
  0x2f   :  { %745 = vmatpush3.msra.mxu1 %v76_v8  ;;  %257 = vmatmul.mubr.f32.vlgmr.msra.gmra.mxu0 %v157_v58  ;;  %v108_v49 = vld [vmem:[#allocation2 + $0x208] sm:$0xff]  ;;  %v107_v51 = vld [vmem:[#allocation2 + $0x200] sm:$0xff]  ;;  %v488_v52 = vld [vmem:[%s1171_s3 + $0x78] sm:$0xff] }
  0x30   :  { %746 = vmatprep.subr.mxu1 %v91_v9  ;;  %751 = vmatprep.subr.mxu0 %v138_v10  ;;  %v487_v53 = vld [vmem:[%s1171_s3 + $0x70] sm:$0xff]  ;;  %v486_v54 = vld [vmem:[%s1171_s3 + $0x68] sm:$0xff]  ;;  %v485_v55 = vld [vmem:[%s1171_s3 + $0x60] sm:$0xff] }
  0x31   :  { %747 = vmatpush3.msra.mxu1 %v75_v11  ;;  %326 = vmatprep.mubr.f32.mxu1 %v166_v12  ;;  %v484_v56 = vld [vmem:[%s1171_s3 + $0x58] sm:$0xff]  ;;  %v483_v57 = vld [vmem:[%s1171_s3 + $0x50] sm:$0xff]  ;;  %v482_v58 = vld [vmem:[%s1171_s3 + $0x48] sm:$0xff] }
  0x32   :  { %752 = vmatpush3.msra.mxu0 %v122_v13  ;;  %327 = vmatmul.mubr.f32.vlgmr.msra.gmra.mxu1 %v164_v5  ;;  %v481_v59 = vld [vmem:[%s1171_s3 + $0x40] sm:$0xff]  ;;  %v480_v60 = vld [vmem:[%s1171_s3 + $0x38] sm:$0xff]  ;;  %v479_v61 = vld [vmem:[%s1171_s3 + $0x30] sm:$0xff] }
  0x33   :  { %753 = vmatprep.subr.mxu0 %v137_v15  ;;  %396 = vmatprep.mubr.f32.mxu0 %v182_v20  ;;  %v478_v62 = vld [vmem:[%s1171_s3 + $0x28] sm:$0xff]  ;;  %v477_v63 = vld [vmem:[%s1171_s3 + $0x20] sm:$0xff]  ;;  %v476_v0 = vld [vmem:[%s1171_s3 + $0x18] sm:$0xff] }
  0x34   :  { %754 = vmatpush3.msra.mxu0 %v121_v17  ;;  %823 = vmatprep.subr.mxu1 %v957_v25  ;;  %v475_v1 = vld [vmem:[%s1171_s3 + $0x10] sm:$0xff]  ;;  %v474_v2 = vld [vmem:[%s1171_s3 + $0x8] sm:$0xff]  ;;  %v473_v3 = vld [vmem:[%s1171_s3] sm:$0xff] }
  0x35   :  { %755 = vmatprep.subr.mxu0 %v136_v18  ;;  %824 = vmatpush3.msra.mxu1 %v140_v22  ;;  %v582_v4 = vld [vmem:[%s1173_s5 + $0x78] sm:$0xff]  ;;  %v581_v5 = vld [vmem:[%s1173_s5 + $0x70] sm:$0xff]  ;;  %v580_v6 = vld [vmem:[%s1173_s5 + $0x68] sm:$0xff] }
  0x36   :  { %756 = vmatpush3.msra.mxu0 %v120_v21  ;;  %825 = vmatprep.subr.mxu1 %v957_v25  ;;  %v579_v7 = vld [vmem:[%s1173_s5 + $0x60] sm:$0xff]  ;;  %v578_v8 = vld [vmem:[%s1173_s5 + $0x58] sm:$0xff]  ;;  %v577_v9 = vld [vmem:[%s1173_s5 + $0x50] sm:$0xff] }
  0x37   :  { %757 = vmatprep.subr.mxu0 %v135_v23  ;;  %826 = vmatpush3.msra.mxu1 %v139_v26  ;;  %v576_v10 = vld [vmem:[%s1173_s5 + $0x48] sm:$0xff]  ;;  %v575_v11 = vld [vmem:[%s1173_s5 + $0x40] sm:$0xff]  ;;  %v574_v12 = vld [vmem:[%s1173_s5 + $0x38] sm:$0xff] }
  0x38   :  { %758 = vmatpush3.msra.mxu0 %v119_v24  ;;  %827 = vmatprep.mubr.msk.f32.mxu1 %vm958_vm1, %v957_v25  ;;  %v573_v13 = vld [vmem:[%s1173_s5 + $0x30] sm:$0xff]  ;;  %v572_v14 = vld [vmem:[%s1173_s5 + $0x28] sm:$0xff]  ;;  %v571_v15 = vld [vmem:[%s1173_s5 + $0x20] sm:$0xff] }
  0x39   :  { %759 = vmatprep.subr.mxu0 %v134_v27  ;;  %828 = vmatmul.mubr.msk.f32.vlgmr.msra.gmra.mxu1 %vm189_vm0, %v181_v28  ;;  %v677_v24 = vld [vmem:[%s1170_s2] ss:$0 sm:$0xff] }
  0x3a   :  { %760 = vmatpush3.msra.mxu0 %v118_v29  ;;  %830 = vmatprep.subr.mxu1 %v957_v25 }
  0x3b   :  { %761 = vmatprep.subr.mxu0 %v133_v30  ;;  %862 = vmatprep.mubr.msk.f32.mxu1 %vm958_vm1, %v957_v25 }
  0x3c   :  { %762 = vmatpush3.msra.mxu0 %v117_v31  ;;  %831 = vmatpush3.msra.mxu1 %v488_v52 }
  0x3d   :  { %763 = vmatprep.subr.mxu0 %v132_v32  ;;  %832 = vmatprep.subr.mxu1 %v957_v25 }
  0x3e   :  { %764 = vmatpush3.msra.mxu0 %v116_v33  ;;  %833 = vmatpush3.msra.mxu1 %v487_v53 }
  0x3f   :  { %765 = vmatprep.subr.mxu0 %v131_v34  ;;  %834 = vmatprep.subr.mxu1 %v957_v25 }
  0x40   :  { %766 = vmatpush3.msra.mxu0 %v115_v35  ;;  %835 = vmatpush3.msra.mxu1 %v486_v54  ;;  %v569_v35 = vld [vmem:[%s1173_s5 + $0x10] sm:$0xff] }
  0x41   :  { %767 = vmatprep.subr.mxu0 %v130_v36  ;;  %836 = vmatprep.subr.mxu1 %v957_v25  ;;  %v568_v36 = vld [vmem:[%s1173_s5 + $0x8] sm:$0xff] }
  0x42   :  { %768 = vmatpush3.msra.mxu0 %v114_v37  ;;  %837 = vmatpush3.msra.mxu1 %v485_v55  ;;  %v567_v37 = vld [vmem:[%s1173_s5] sm:$0xff] }
  0x43   :  { %769 = vmatprep.subr.mxu0 %v129_v38  ;;  %838 = vmatprep.subr.mxu1 %v957_v25  ;;  %v679_v38 = vld [vmem:[%s1172_s4] ss:$0 sm:$0xff] }
  0x44   :  { %770 = vmatpush3.msra.mxu0 %v113_v39  ;;  %839 = vmatpush3.msra.mxu1 %v484_v56 }
  0x45   :  { %771 = vmatprep.subr.mxu0 %v128_v40  ;;  %840 = vmatprep.subr.mxu1 %v957_v25 }
  0x46   :  { %772 = vmatpush3.msra.mxu0 %v112_v41  ;;  %841 = vmatpush3.msra.mxu1 %v483_v57 }
  0x47   :  { %773 = vmatprep.subr.mxu0 %v127_v42  ;;  %842 = vmatprep.subr.mxu1 %v957_v25 }
  0x48   :  { %774 = vmatpush3.msra.mxu0 %v111_v43  ;;  %843 = vmatpush3.msra.mxu1 %v482_v58  ;;  %v680_v43 = vld [vmem:[%s1174_s6] ss:$0 sm:$0xff] }
  0x49   :  { %775 = vmatprep.subr.mxu0 %v126_v44  ;;  %844 = vmatprep.subr.mxu1 %v957_v25 }
  0x4a   :  { %776 = vmatpush3.msra.mxu0 %v110_v45  ;;  %845 = vmatpush3.msra.mxu1 %v481_v59 }
  0x4b   :  { %777 = vmatprep.subr.mxu0 %v125_v46  ;;  %846 = vmatprep.subr.mxu1 %v957_v25 }
  0x4c   :  { %778 = vmatpush3.msra.mxu0 %v109_v47  ;;  %847 = vmatpush3.msra.mxu1 %v480_v60 }
  0x4d   :  { %779 = vmatprep.subr.mxu0 %v124_v48  ;;  %848 = vmatprep.subr.mxu1 %v957_v25 }
  0x4e   :  { %780 = vmatpush3.msra.mxu0 %v108_v49  ;;  %849 = vmatpush3.msra.mxu1 %v479_v61 }
  0x4f   :  { %781 = vmatprep.subr.mxu0 %v123_v50  ;;  %850 = vmatprep.subr.mxu1 %v957_v25 }
  0x50   :  { %782 = vmatpush3.msra.mxu0 %v107_v51  ;;  %851 = vmatpush3.msra.mxu1 %v478_v62 }
  0x51   :  { %397 = vmatmul.mubr.f32.vlgmr.msra.gmra.mxu0 %v1014_v16  ;;  %865 = vmatprep.subr.mxu0 %v957_v25  ;;  %v570_v16 = vld [vmem:[%s1173_s5 + $0x18] sm:$0xff]  ;;  %s929_s5 = scalar_lea.vmem %s669_s28, 32 }
  0x52   :  { %897 = vmatprep.mubr.msk.f32.mxu0 %vm958_vm1, %v957_v25  ;;  %852 = vmatprep.subr.mxu1 %v957_v25  ;;  %p930_p5 = scmp.ne.s32.totalorder %s669_s28, %s929_s5  ;;  %p935_p7 = scmp.lt.s32.totalorder %s929_s5, %s929_s5 }
  0x53   :  { %853 = vmatpush3.msra.mxu1 %v477_v63  ;;  %866 = vmatpush3.msra.mxu0 %v582_v4 }
  0x54   :  { %854 = vmatprep.subr.mxu1 %v957_v25  ;;  %867 = vmatprep.subr.mxu0 %v957_v25  ;;  %p936_p8 = por %p935_p7, %p934_p6 }
  0x55   :  { %855 = vmatpush3.msra.mxu1 %v476_v0  ;;  %868 = vmatpush3.msra.mxu0 %v581_v5 }
  0x56   :  { %856 = vmatprep.subr.mxu1 %v957_v25  ;;  %869 = vmatprep.subr.mxu0 %v957_v25  ;;  %p937_p9 = pnand %p936_p8, %p930_p5 }
  0x57   :  { %857 = vmatpush3.msra.mxu1 %v475_v1  ;;  %870 = vmatpush3.msra.mxu0 %v580_v6 }
  0x58   :  { %858 = vmatprep.subr.mxu1 %v957_v25  ;;  %871 = vmatprep.subr.mxu0 %v957_v25 }
  0x59   :  { %859 = vmatpush3.msra.mxu1 %v474_v2  ;;  %872 = vmatpush3.msra.mxu0 %v579_v7 }
  0x5a   :  { %860 = vmatprep.subr.mxu1 %v957_v25  ;;  %873 = vmatprep.subr.mxu0 %v957_v25 }
  0x5b   :  { %861 = vmatpush3.msra.mxu1 %v473_v3  ;;  %874 = vmatpush3.msra.mxu0 %v578_v8 }
  0x5c   :  { %875 = vmatprep.subr.mxu0 %v957_v25 }
  0x5d   :  { %876 = vmatpush3.msra.mxu0 %v577_v9 }
  0x5e   :  { %877 = vmatprep.subr.mxu0 %v957_v25 }
  0x5f   :  { %878 = vmatpush3.msra.mxu0 %v576_v10 }
  0x60   :  { %879 = vmatprep.subr.mxu0 %v957_v25 }
  0x61   :  { %880 = vmatpush3.msra.mxu0 %v575_v11 }
  0x62   :  { %881 = vmatprep.subr.mxu0 %v957_v25 }
  0x63   :  { %882 = vmatpush3.msra.mxu0 %v574_v12 }
  0x64   :  { %883 = vmatprep.subr.mxu0 %v957_v25 }
  0x65   :  { %884 = vmatpush3.msra.mxu0 %v573_v13 }
  0x66   :  { %885 = vmatprep.subr.mxu0 %v957_v25 }
  0x67   :  { %886 = vmatpush3.msra.mxu0 %v572_v14 }
  0x68   :  { %887 = vmatprep.subr.mxu0 %v957_v25 }
  0x69   :  { %888 = vmatpush3.msra.mxu0 %v571_v15 }
  0x6a   :  { %889 = vmatprep.subr.mxu0 %v957_v25 }
  0x6b   :  { %890 = vmatpush3.msra.mxu0 %v570_v16 }
  0x6c   :  { %891 = vmatprep.subr.mxu0 %v957_v25 }
  0x6d   :  { %892 = vmatpush3.msra.mxu0 %v569_v35 }
  0x6e   :  { %893 = vmatprep.subr.mxu0 %v957_v25 }
  0x6f   :  { %894 = vmatpush3.msra.mxu0 %v568_v36 }
  0x70   :  { %895 = vmatprep.subr.mxu0 %v957_v25 }
  0x71   :  { %896 = vmatpush3.msra.mxu0 %v567_v37 }
  0xef   :  { %v713_v21 = vpop.f32.mrf.mxu0 }
  0xf1   :  { %v714_v22 = vpop.f32.mrf.mxu0 }
  0xf2   :  { %v748_v17 = vpop.f32.mrf.mxu1  ;;  %v715_v23 = vadd.f32 %v714_v22, %v713_v21 }
  0xf4   :  { %v749_v18 = vpop.f32.mrf.mxu1  ;;  %v259_v26 = vadd.f32 %v715_v23, %v677_v24 }
  0xf5   :  { %v750_v27 = vadd.f32 %v749_v18, %v748_v17 }
  0xf7   :  { %v329_v30 = vadd.f32 %v750_v27, %v259_v26 }
  0xf9   :  { %v468_v19 = vpop.f32.mrf.mxu1 }
  0xfb   :  { %v829_v20 = vpop.f32.mrf.mxu1 }
 0x111   :  { %v783_v28 = vpop.f32.mrf.mxu0 }
 0x113   :  { %v784_v29 = vpop.f32.mrf.mxu0 }
 0x114   :  { %v785_v31 = vadd.f32 %v784_v29, %v783_v28 }
 0x116   :  { %v399_v32 = vadd.f32 %v785_v31, %v329_v30 }
 0x118   :  { %v469_v33 = vadd.f32 %v468_v19, %v399_v32 }
 0x11a   :  { %v472_v34 = vmax.f32 %v469_v33, 0.0 }
 0x11c   :  { %863 = vmatmul.mubr.f32.vlgmr.msra.gmra.mxu1 %v472_v34 }
 0x1dc   :  { %v562_v39 = vpop.f32.mrf.mxu1 }
 0x1dd   :  { %v563_v40 = vadd.f32 %v679_v38, %v562_v39 }
 0x1de   :  { %v864_v41 = vpop.f32.mrf.mxu1 }
 0x1df   :  { %v566_v42 = vmax.f32 %v563_v40, 0.0 }
 0x1e1   :  { %898 = vmatmul.mubr.f32.vlgmr.msra.gmra.mxu0 %v566_v42 }
 0x2a1   :  { %v656_v25 = vpop.f32.mrf.mxu0 }
 0x2a2   :  { %v657_v44 = vadd.f32 %v680_v43, %v656_v25 }
 0x2a3   :  { %v899_v45 = vpop.f32.mrf.mxu0 }
 0x2a4   :  { %661 = vst.msk [vmem:[#allocation5] sm:$0x3] %vm660_vm2, %v657_v44 }
 0x2a5   :  { %940 = shalt.err (!%p937_p9)
}
 0x2a6   :  { %671 = dma.vmem_to_hbm [thread:$0]  %s669_s28, 32, %s1175_s7, [#allocation4]  }
 0x2a7   :  { %951 = dma.done.wait [#allocation4], 32  }
 0x2a8   :  { %952 = vsyncadd [#allocation4], 4294967264 }
 0x2a9   :  { %675 = vsyncpa [#allocation3], 1 }
 0x2aa   :  { %676 = vsyncpa [#allocation4], 1 }

</bundles_post_ra>
